<compile_context>
chip_gen: v7x
topology: tpu7x:2x2x1
jax: 0.10.0
libtpu: 0.0.40
codegen_flags: <defaults>
</compile_context>

<pallas_src>
import jax
import jax.numpy as jnp
from jax.experimental import pallas as pl
from jax.experimental.pallas import tpu as pltpu


def _lstm_kernel(x_ref, hc0_ref, wpack_ref, wopack_ref, out_ref, hncn_ref):
    T, I = x_ref.shape
    H = hc0_ref.shape[1]
    # Packed-weight section offsets (static, must match the wrapper).
    i_pad = ((I + 15) // 16) * 16
    bias_row = i_pad
    whh_row = i_pad + 16

    mxu_dtype = wpack_ref.dtype               # bf16 (default) or f32

    wih = wpack_ref[0:I, :]                                          # (I, 4H)
    bias = wpack_ref[bias_row:bias_row + 1, :].astype(jnp.float32)   # (1, 4H)
    whh = wpack_ref[whh_row:whh_row + H, :]                          # (H, 4H), loop-invariant
    # TODO(synk): hold whh weight-stationary across T steps via
    # pltpu.matmul_push_rhs / matmul_acc_lhs / matmul_pop if the bundle dump
    # shows Mosaic re-pushing the RHS into the systolic array each step.

    # Hoisted input projection for all T steps (off the serial critical path):
    # (T, 4H) = x @ W_ih^T + b; g-gate columns already pre-scaled by 2.
    gx = (jnp.dot(x_ref[...].astype(mxu_dtype), wih,
                  preferred_element_type=jnp.float32) + bias)        # (T, 4H) f32

    h = hc0_ref[0:1, :].astype(jnp.float32)   # (1, H)
    c = hc0_ref[1:2, :].astype(jnp.float32)   # (1, H)

    # Serial recurrence: T is small & static, so a full static unroll is fine.
    # (Cap the unroll / switch to lax.fori_loop if T grows to many dozens.)
    hs_rows = []
    for t in range(T):
        gates = gx[t:t + 1, :] + jnp.dot(h.astype(mxu_dtype), whh,
                                         preferred_element_type=jnp.float32)
        # Single EUP pass over the full (1,4H) vreg: i/f/o lanes hold raw gate
        # pre-activations, g lanes hold 2*g, so tanh(g) = 2*sigmoid(2g) - 1.
        sig = jax.nn.sigmoid(gates)
        i_g = sig[:, 0 * H:1 * H]
        f_g = sig[:, 1 * H:2 * H]
        g_g = 2.0 * sig[:, 2 * H:3 * H] - 1.0
        o_g = sig[:, 3 * H:4 * H]
        c = f_g * c + i_g * g_g
        h = o_g * jnp.tanh(c)                 # second (and last) EUP push per step
        hs_rows.append(h)

    hncn_ref[...] = jnp.concatenate([h, c], axis=0)       # (2, H)

    # Batched hidden2out Linear + sigmoid: one (T,H)@(H,O) f32 matmul, one store.
    hs = jnp.concatenate(hs_rows, axis=0)                 # (T, H), vreg-resident
    wout = wopack_ref[0:H, :]                             # (H, O)
    bout = wopack_ref[H:H + 1, :]                         # (1, O)
    out_ref[...] = jax.nn.sigmoid(
        jnp.dot(hs, wout, preferred_element_type=jnp.float32) + bout)


def lstm_forward(x, h0, c0, w_ih, w_hh, b_ih, b_hh, w_out, b_out,
                 *, use_bf16_mxu=True):
    """x: (T, B=1, I); h0/c0: (num_layers=1, B=1, H).

    Returns (output, (h_n, c_n)) matching the PyTorch module:
      output: (T, output_size) = sigmoid(Linear(lstm_out.view(T, -1)))
      h_n, c_n: (1, 1, H)
    """
    T, B, I = x.shape
    H = w_hh.shape[1]
    O = w_out.shape[0]
    assert B == 1, "hidden2out(lstm_out.view(T, -1)) requires batch == 1"

    # ---- operand packing (cheap; in real use hoist out of the hot path) ----
    # g-gate columns pre-scaled by 2 (exact in fp) so the kernel needs only one
    # sigmoid per step: tanh(g) = 2*sigmoid(2g) - 1.
    g_scale = jnp.ones((4 * H,), jnp.float32).at[2 * H:3 * H].set(2.0)
    wih_t = w_ih.T * g_scale                  # (I, 4H)
    whh_t = w_hh.T * g_scale                  # (H, 4H)
    bias = (b_ih + b_hh) * g_scale            # (4H,)

    i_pad = ((I + 15) // 16) * 16             # 16-row-aligned sections (f32 & bf16 tiles)
    whh_row = i_pad + 16
    n_rows = whh_row + H
    wpack = (jnp.zeros((n_rows, 4 * H), jnp.float32)
             .at[0:I, :].set(wih_t)
             .at[i_pad, :].set(bias)
             .at[whh_row:whh_row + H, :].set(whh_t))

    wopack = jnp.concatenate([w_out.T, b_out[None, :]], axis=0)   # (H+1, O) f32
    hc0 = jnp.concatenate([h0[0], c0[0]], axis=0)                 # (2, H)  f32
    x2d = x.reshape(T, I)                                         # (T, I), B=1 folded out

    if use_bf16_mxu:
        # bf16 MXU operands, f32 accumulation; gate/state math stays f32.
        wpack = wpack.astype(jnp.bfloat16)
        x2d = x2d.astype(jnp.bfloat16)

    full = lambda shape: pl.BlockSpec(shape, lambda i: (0,) * len(shape))

    out, hncn = pl.pallas_call(
        _lstm_kernel,
        out_shape=(
            jax.ShapeDtypeStruct((T, O), jnp.float32),
            jax.ShapeDtypeStruct((2, H), jnp.float32),
        ),
        grid_spec=pltpu.PrefetchScalarGridSpec(
            num_scalar_prefetch=0,
            grid=(1,),                        # single invocation; T loop is in-kernel
            in_specs=[
                full((T, I)),                 # x, fully VMEM-resident
                full((2, H)),                 # [h0; c0]
                full((n_rows, 4 * H)),        # [W_ih^T | bias | W_hh^T] pack
                full((H + 1, O)),             # [W_out^T ; b_out] pack
            ],
            out_specs=[
                full((T, O)),                 # all per-step outputs, one store
                full((2, H)),                 # [h_n; c_n]
            ],
        ),
        compiler_params=pltpu.CompilerParams(
            dimension_semantics=("arbitrary",)),
        # TODO(synk): for long T on v7x (64 MiB VMEM), chunk the hoisted gx /
        # output Linear over T with pltpu.emit_pipeline and set
        # vmem_limit_bytes; at these sizes everything resident is < 50 KiB.
    )(x2d, hc0, wpack, wopack)

    return out, (hncn[0:1][None], hncn[1:2][None])


def _reference(x, h0, c0, w_ih, w_hh, b_ih, b_hh, w_out, b_out):
    """Pure-JAX reference replicating torch.nn.LSTM semantics (gate order ifgo)."""
    T, B, I = x.shape
    H = w_hh.shape[1]

    def step(carry, x_t):
        h, c = carry
        gates = x_t @ w_ih.T + h @ w_hh.T + b_ih + b_hh
        i = jax.nn.sigmoid(gates[:, 0 * H:1 * H])
        f = jax.nn.sigmoid(gates[:, 1 * H:2 * H])
        g = jnp.tanh(gates[:, 2 * H:3 * H])
        o = jax.nn.sigmoid(gates[:, 3 * H:4 * H])
        c = f * c + i * g
        h = o * jnp.tanh(c)
        return (h, c), h

    (h_n, c_n), hs = jax.lax.scan(step, (h0[0], c0[0]), x)
    out = jax.nn.sigmoid(hs.reshape(T, -1) @ w_out.T + b_out)
    return out, (h_n[None], c_n[None])


if __name__ == "__main__":
    input_size, hidden_size, output_size = 16, 32, 8
    seq_len, batch = 8, 1   # nn.LSTM batch_first=False; init_hidden() fixes batch=1

    key = jax.random.PRNGKey(0)
    ks = jax.random.split(key, 7)
    scale = 1.0 / jnp.sqrt(hidden_size)

    w_ih = jax.random.uniform(ks[0], (4 * hidden_size, input_size), jnp.float32, -scale, scale)
    w_hh = jax.random.uniform(ks[1], (4 * hidden_size, hidden_size), jnp.float32, -scale, scale)
    b_ih = jax.random.uniform(ks[2], (4 * hidden_size,), jnp.float32, -scale, scale)
    b_hh = jax.random.uniform(ks[3], (4 * hidden_size,), jnp.float32, -scale, scale)
    w_out = jax.random.uniform(ks[4], (output_size, hidden_size), jnp.float32, -scale, scale)
    b_out = jax.random.uniform(ks[5], (output_size,), jnp.float32, -scale, scale)

    x = jax.random.normal(ks[6], (seq_len, batch, input_size), jnp.float32)
    h0 = jnp.zeros((1, batch, hidden_size), jnp.float32)   # init_hidden()
    c0 = jnp.zeros((1, batch, hidden_size), jnp.float32)

    ref_out, (ref_h, ref_c) = _reference(x, h0, c0, w_ih, w_hh, b_ih, b_hh, w_out, b_out)

    # --- exact f32 path: matches the PyTorch semantics to 1e-5 ---
    out32, (h32, c32) = lstm_forward(x, h0, c0, w_ih, w_hh, b_ih, b_hh,
                                     w_out, b_out, use_bf16_mxu=False)
    out32 = jax.block_until_ready(out32)
    h32 = jax.block_until_ready(h32)
    c32 = jax.block_until_ready(c32)
    assert out32.shape == (seq_len, output_size)
    assert h32.shape == (1, batch, hidden_size) and c32.shape == (1, batch, hidden_size)
    assert jnp.allclose(out32, ref_out, atol=1e-5)
    assert jnp.allclose(h32, ref_h, atol=1e-5)
    assert jnp.allclose(c32, ref_c, atol=1e-5)

    # --- default fast path: bf16 MXU operands, f32 accumulation & state math ---
    out, (h_n, c_n) = lstm_forward(x, h0, c0, w_ih, w_hh, b_ih, b_hh, w_out, b_out)
    out = jax.block_until_ready(out)
    h_n = jax.block_until_ready(h_n)
    c_n = jax.block_until_ready(c_n)
    assert out.shape == (seq_len, output_size)
    assert h_n.shape == (1, batch, hidden_size) and c_n.shape == (1, batch, hidden_size)
    assert jnp.allclose(out, ref_out, atol=2e-2)
    assert jnp.allclose(h_n, ref_h, atol=2e-2)
    assert jnp.allclose(c_n, ref_c, atol=5e-2)

    print("KERNEL_OK")
</pallas_src>

<mosaic_0001>
module attributes {stable_mosaic.version = 11 : i64} {
  func.func @_lstm_kernel(%arg0: i32, %arg1: memref<8x16xf32, #tpu.memory_space<vmem>>, %arg2: memref<2x32xf32, #tpu.memory_space<vmem>>, %arg3: memref<64x128xf32, #tpu.memory_space<vmem>>, %arg4: memref<33x8xf32, #tpu.memory_space<vmem>>, %arg5: memref<8x8xf32, #tpu.memory_space<vmem>>, %arg6: memref<2x32xf32, #tpu.memory_space<vmem>>) attributes {dimension_semantics = [#tpu.dimension_semantics<arbitrary>], iteration_bounds = array<i64: 1>, scalar_prefetch = 0 : i64, scratch_operands = 0 : i64, tpu.core_type = #tpu.core_type<tc>, window_params = [{pipeline_mode = #tpu.pipeline_mode<synchronous>, transform_indices = @transform_0, window_bounds = array<i64: 8, 16>}, {pipeline_mode = #tpu.pipeline_mode<synchronous>, transform_indices = @transform_1, window_bounds = array<i64: 2, 32>}, {pipeline_mode = #tpu.pipeline_mode<synchronous>, transform_indices = @transform_2, window_bounds = array<i64: 64, 128>}, {pipeline_mode = #tpu.pipeline_mode<synchronous>, transform_indices = @transform_3, window_bounds = array<i64: 33, 8>}, {pipeline_mode = #tpu.pipeline_mode<synchronous>, transform_indices = @transform_4, window_bounds = array<i64: 8, 8>}, {pipeline_mode = #tpu.pipeline_mode<synchronous>, transform_indices = @transform_5, window_bounds = array<i64: 2, 32>}]} {
    %c0 = arith.constant 0 : index
    %c0_0 = arith.constant 0 : index
    %0 = vector.load %arg3[%c0, %c0_0] : memref<64x128xf32, #tpu.memory_space<vmem>>, vector<16x128xf32>
    %c16 = arith.constant 16 : index
    %c0_1 = arith.constant 0 : index
    %1 = vector.load %arg3[%c16, %c0_1] : memref<64x128xf32, #tpu.memory_space<vmem>>, vector<1x128xf32>
    %c32 = arith.constant 32 : index
    %c0_2 = arith.constant 0 : index
    %2 = vector.load %arg3[%c32, %c0_2] : memref<64x128xf32, #tpu.memory_space<vmem>>, vector<32x128xf32>
    %c0_3 = arith.constant 0 : index
    %c0_4 = arith.constant 0 : index
    %3 = vector.load %arg1[%c0_3, %c0_4] : memref<8x16xf32, #tpu.memory_space<vmem>>, vector<8x16xf32>
    %cst = arith.constant dense<0.000000e+00> : vector<8x128xf32>
    %4 = tpu.matmul %3, %0, %cst {dimension_numbers = #tpu.dot_dimension_numbers<[1], [0], [0], [1], [0, 0, 1, 1], [], []>} : vector<8x16xf32>, vector<16x128xf32>, vector<8x128xf32> -> vector<8x128xf32>
    %5 = vector.broadcast %1 : vector<1x128xf32> to vector<8x128xf32>
    %6 = arith.addf %4, %5 : vector<8x128xf32>
    %c0_5 = arith.constant 0 : index
    %c0_6 = arith.constant 0 : index
    %7 = vector.load %arg2[%c0_5, %c0_6] : memref<2x32xf32, #tpu.memory_space<vmem>>, vector<1x32xf32>
    %c1 = arith.constant 1 : index
    %c0_7 = arith.constant 0 : index
    %8 = vector.load %arg2[%c1, %c0_7] : memref<2x32xf32, #tpu.memory_space<vmem>>, vector<1x32xf32>
    %9 = vector.extract_strided_slice %6 {offsets = [0, 0], sizes = [1, 128], strides = [1, 1]} : vector<8x128xf32> to vector<1x128xf32>
    %cst_8 = arith.constant dense<0.000000e+00> : vector<1x128xf32>
    %10 = tpu.matmul %7, %2, %cst_8 {dimension_numbers = #tpu.dot_dimension_numbers<[1], [0], [0], [1], [0, 0, 1, 1], [], []>} : vector<1x32xf32>, vector<32x128xf32>, vector<1x128xf32> -> vector<1x128xf32>
    %11 = arith.addf %9, %10 : vector<1x128xf32>
    %12 = arith.negf %11 : vector<1x128xf32>
    %13 = math.exp %12 : vector<1x128xf32>
    %cst_9 = arith.constant 1.000000e+00 : f32
    %14 = vector.broadcast %cst_9 : f32 to vector<1x128xf32>
    %15 = arith.addf %14, %13 : vector<1x128xf32>
    %16 = arith.divf %14, %15 : vector<1x128xf32>
    %17 = vector.extract_strided_slice %16 {offsets = [0, 0], sizes = [1, 32], strides = [1, 1]} : vector<1x128xf32> to vector<1x32xf32>
    %18 = vector.extract_strided_slice %16 {offsets = [0, 32], sizes = [1, 32], strides = [1, 1]} : vector<1x128xf32> to vector<1x32xf32>
    %19 = vector.extract_strided_slice %16 {offsets = [0, 64], sizes = [1, 32], strides = [1, 1]} : vector<1x128xf32> to vector<1x32xf32>
    %cst_10 = arith.constant 2.000000e+00 : f32
    %20 = vector.broadcast %cst_10 : f32 to vector<1x32xf32>
    %21 = arith.mulf %20, %19 : vector<1x32xf32>
    %cst_11 = arith.constant 1.000000e+00 : f32
    %22 = vector.broadcast %cst_11 : f32 to vector<1x32xf32>
    %23 = arith.subf %21, %22 : vector<1x32xf32>
    %24 = vector.extract_strided_slice %16 {offsets = [0, 96], sizes = [1, 32], strides = [1, 1]} : vector<1x128xf32> to vector<1x32xf32>
    %25 = arith.mulf %18, %8 : vector<1x32xf32>
    %26 = arith.mulf %17, %23 : vector<1x32xf32>
    %27 = arith.addf %25, %26 : vector<1x32xf32>
    %28 = math.tanh %27 : vector<1x32xf32>
    %29 = arith.mulf %24, %28 : vector<1x32xf32>
    %30 = vector.extract_strided_slice %6 {offsets = [1, 0], sizes = [1, 128], strides = [1, 1]} : vector<8x128xf32> to vector<1x128xf32>
    %cst_12 = arith.constant dense<0.000000e+00> : vector<1x128xf32>
    %31 = tpu.matmul %29, %2, %cst_12 {dimension_numbers = #tpu.dot_dimension_numbers<[1], [0], [0], [1], [0, 0, 1, 1], [], []>} : vector<1x32xf32>, vector<32x128xf32>, vector<1x128xf32> -> vector<1x128xf32>
    %32 = arith.addf %30, %31 : vector<1x128xf32>
    %33 = arith.negf %32 : vector<1x128xf32>
    %34 = math.exp %33 : vector<1x128xf32>
    %cst_13 = arith.constant 1.000000e+00 : f32
    %35 = vector.broadcast %cst_13 : f32 to vector<1x128xf32>
    %36 = arith.addf %35, %34 : vector<1x128xf32>
    %37 = arith.divf %35, %36 : vector<1x128xf32>
    %38 = vector.extract_strided_slice %37 {offsets = [0, 0], sizes = [1, 32], strides = [1, 1]} : vector<1x128xf32> to vector<1x32xf32>
    %39 = vector.extract_strided_slice %37 {offsets = [0, 32], sizes = [1, 32], strides = [1, 1]} : vector<1x128xf32> to vector<1x32xf32>
    %40 = vector.extract_strided_slice %37 {offsets = [0, 64], sizes = [1, 32], strides = [1, 1]} : vector<1x128xf32> to vector<1x32xf32>
    %cst_14 = arith.constant 2.000000e+00 : f32
    %41 = vector.broadcast %cst_14 : f32 to vector<1x32xf32>
    %42 = arith.mulf %41, %40 : vector<1x32xf32>
    %cst_15 = arith.constant 1.000000e+00 : f32
    %43 = vector.broadcast %cst_15 : f32 to vector<1x32xf32>
    %44 = arith.subf %42, %43 : vector<1x32xf32>
    %45 = vector.extract_strided_slice %37 {offsets = [0, 96], sizes = [1, 32], strides = [1, 1]} : vector<1x128xf32> to vector<1x32xf32>
    %46 = arith.mulf %39, %27 : vector<1x32xf32>
    %47 = arith.mulf %38, %44 : vector<1x32xf32>
    %48 = arith.addf %46, %47 : vector<1x32xf32>
    %49 = math.tanh %48 : vector<1x32xf32>
    %50 = arith.mulf %45, %49 : vector<1x32xf32>
    %51 = vector.extract_strided_slice %6 {offsets = [2, 0], sizes = [1, 128], strides = [1, 1]} : vector<8x128xf32> to vector<1x128xf32>
    %cst_16 = arith.constant dense<0.000000e+00> : vector<1x128xf32>
    %52 = tpu.matmul %50, %2, %cst_16 {dimension_numbers = #tpu.dot_dimension_numbers<[1], [0], [0], [1], [0, 0, 1, 1], [], []>} : vector<1x32xf32>, vector<32x128xf32>, vector<1x128xf32> -> vector<1x128xf32>
    %53 = arith.addf %51, %52 : vector<1x128xf32>
    %54 = arith.negf %53 : vector<1x128xf32>
    %55 = math.exp %54 : vector<1x128xf32>
    %cst_17 = arith.constant 1.000000e+00 : f32
    %56 = vector.broadcast %cst_17 : f32 to vector<1x128xf32>
    %57 = arith.addf %56, %55 : vector<1x128xf32>
    %58 = arith.divf %56, %57 : vector<1x128xf32>
    %59 = vector.extract_strided_slice %58 {offsets = [0, 0], sizes = [1, 32], strides = [1, 1]} : vector<1x128xf32> to vector<1x32xf32>
    %60 = vector.extract_strided_slice %58 {offsets = [0, 32], sizes = [1, 32], strides = [1, 1]} : vector<1x128xf32> to vector<1x32xf32>
    %61 = vector.extract_strided_slice %58 {offsets = [0, 64], sizes = [1, 32], strides = [1, 1]} : vector<1x128xf32> to vector<1x32xf32>
    %cst_18 = arith.constant 2.000000e+00 : f32
    %62 = vector.broadcast %cst_18 : f32 to vector<1x32xf32>
    %63 = arith.mulf %62, %61 : vector<1x32xf32>
    %cst_19 = arith.constant 1.000000e+00 : f32
    %64 = vector.broadcast %cst_19 : f32 to vector<1x32xf32>
    %65 = arith.subf %63, %64 : vector<1x32xf32>
    %66 = vector.extract_strided_slice %58 {offsets = [0, 96], sizes = [1, 32], strides = [1, 1]} : vector<1x128xf32> to vector<1x32xf32>
    %67 = arith.mulf %60, %48 : vector<1x32xf32>
    %68 = arith.mulf %59, %65 : vector<1x32xf32>
    %69 = arith.addf %67, %68 : vector<1x32xf32>
    %70 = math.tanh %69 : vector<1x32xf32>
    %71 = arith.mulf %66, %70 : vector<1x32xf32>
    %72 = vector.extract_strided_slice %6 {offsets = [3, 0], sizes = [1, 128], strides = [1, 1]} : vector<8x128xf32> to vector<1x128xf32>
    %cst_20 = arith.constant dense<0.000000e+00> : vector<1x128xf32>
    %73 = tpu.matmul %71, %2, %cst_20 {dimension_numbers = #tpu.dot_dimension_numbers<[1], [0], [0], [1], [0, 0, 1, 1], [], []>} : vector<1x32xf32>, vector<32x128xf32>, vector<1x128xf32> -> vector<1x128xf32>
    %74 = arith.addf %72, %73 : vector<1x128xf32>
    %75 = arith.negf %74 : vector<1x128xf32>
    %76 = math.exp %75 : vector<1x128xf32>
    %cst_21 = arith.constant 1.000000e+00 : f32
    %77 = vector.broadcast %cst_21 : f32 to vector<1x128xf32>
    %78 = arith.addf %77, %76 : vector<1x128xf32>
    %79 = arith.divf %77, %78 : vector<1x128xf32>
    %80 = vector.extract_strided_slice %79 {offsets = [0, 0], sizes = [1, 32], strides = [1, 1]} : vector<1x128xf32> to vector<1x32xf32>
    %81 = vector.extract_strided_slice %79 {offsets = [0, 32], sizes = [1, 32], strides = [1, 1]} : vector<1x128xf32> to vector<1x32xf32>
    %82 = vector.extract_strided_slice %79 {offsets = [0, 64], sizes = [1, 32], strides = [1, 1]} : vector<1x128xf32> to vector<1x32xf32>
    %cst_22 = arith.constant 2.000000e+00 : f32
    %83 = vector.broadcast %cst_22 : f32 to vector<1x32xf32>
    %84 = arith.mulf %83, %82 : vector<1x32xf32>
    %cst_23 = arith.constant 1.000000e+00 : f32
    %85 = vector.broadcast %cst_23 : f32 to vector<1x32xf32>
    %86 = arith.subf %84, %85 : vector<1x32xf32>
    %87 = vector.extract_strided_slice %79 {offsets = [0, 96], sizes = [1, 32], strides = [1, 1]} : vector<1x128xf32> to vector<1x32xf32>
    %88 = arith.mulf %81, %69 : vector<1x32xf32>
    %89 = arith.mulf %80, %86 : vector<1x32xf32>
    %90 = arith.addf %88, %89 : vector<1x32xf32>
    %91 = math.tanh %90 : vector<1x32xf32>
    %92 = arith.mulf %87, %91 : vector<1x32xf32>
    %93 = vector.extract_strided_slice %6 {offsets = [4, 0], sizes = [1, 128], strides = [1, 1]} : vector<8x128xf32> to vector<1x128xf32>
    %cst_24 = arith.constant dense<0.000000e+00> : vector<1x128xf32>
    %94 = tpu.matmul %92, %2, %cst_24 {dimension_numbers = #tpu.dot_dimension_numbers<[1], [0], [0], [1], [0, 0, 1, 1], [], []>} : vector<1x32xf32>, vector<32x128xf32>, vector<1x128xf32> -> vector<1x128xf32>
    %95 = arith.addf %93, %94 : vector<1x128xf32>
    %96 = arith.negf %95 : vector<1x128xf32>
    %97 = math.exp %96 : vector<1x128xf32>
    %cst_25 = arith.constant 1.000000e+00 : f32
    %98 = vector.broadcast %cst_25 : f32 to vector<1x128xf32>
    %99 = arith.addf %98, %97 : vector<1x128xf32>
    %100 = arith.divf %98, %99 : vector<1x128xf32>
    %101 = vector.extract_strided_slice %100 {offsets = [0, 0], sizes = [1, 32], strides = [1, 1]} : vector<1x128xf32> to vector<1x32xf32>
    %102 = vector.extract_strided_slice %100 {offsets = [0, 32], sizes = [1, 32], strides = [1, 1]} : vector<1x128xf32> to vector<1x32xf32>
    %103 = vector.extract_strided_slice %100 {offsets = [0, 64], sizes = [1, 32], strides = [1, 1]} : vector<1x128xf32> to vector<1x32xf32>
    %cst_26 = arith.constant 2.000000e+00 : f32
    %104 = vector.broadcast %cst_26 : f32 to vector<1x32xf32>
    %105 = arith.mulf %104, %103 : vector<1x32xf32>
    %cst_27 = arith.constant 1.000000e+00 : f32
    %106 = vector.broadcast %cst_27 : f32 to vector<1x32xf32>
    %107 = arith.subf %105, %106 : vector<1x32xf32>
    %108 = vector.extract_strided_slice %100 {offsets = [0, 96], sizes = [1, 32], strides = [1, 1]} : vector<1x128xf32> to vector<1x32xf32>
    %109 = arith.mulf %102, %90 : vector<1x32xf32>
    %110 = arith.mulf %101, %107 : vector<1x32xf32>
    %111 = arith.addf %109, %110 : vector<1x32xf32>
    %112 = math.tanh %111 : vector<1x32xf32>
    %113 = arith.mulf %108, %112 : vector<1x32xf32>
    %114 = vector.extract_strided_slice %6 {offsets = [5, 0], sizes = [1, 128], strides = [1, 1]} : vector<8x128xf32> to vector<1x128xf32>
    %cst_28 = arith.constant dense<0.000000e+00> : vector<1x128xf32>
    %115 = tpu.matmul %113, %2, %cst_28 {dimension_numbers = #tpu.dot_dimension_numbers<[1], [0], [0], [1], [0, 0, 1, 1], [], []>} : vector<1x32xf32>, vector<32x128xf32>, vector<1x128xf32> -> vector<1x128xf32>
    %116 = arith.addf %114, %115 : vector<1x128xf32>
    %117 = arith.negf %116 : vector<1x128xf32>
    %118 = math.exp %117 : vector<1x128xf32>
    %cst_29 = arith.constant 1.000000e+00 : f32
    %119 = vector.broadcast %cst_29 : f32 to vector<1x128xf32>
    %120 = arith.addf %119, %118 : vector<1x128xf32>
    %121 = arith.divf %119, %120 : vector<1x128xf32>
    %122 = vector.extract_strided_slice %121 {offsets = [0, 0], sizes = [1, 32], strides = [1, 1]} : vector<1x128xf32> to vector<1x32xf32>
    %123 = vector.extract_strided_slice %121 {offsets = [0, 32], sizes = [1, 32], strides = [1, 1]} : vector<1x128xf32> to vector<1x32xf32>
    %124 = vector.extract_strided_slice %121 {offsets = [0, 64], sizes = [1, 32], strides = [1, 1]} : vector<1x128xf32> to vector<1x32xf32>
    %cst_30 = arith.constant 2.000000e+00 : f32
    %125 = vector.broadcast %cst_30 : f32 to vector<1x32xf32>
    %126 = arith.mulf %125, %124 : vector<1x32xf32>
    %cst_31 = arith.constant 1.000000e+00 : f32
    %127 = vector.broadcast %cst_31 : f32 to vector<1x32xf32>
    %128 = arith.subf %126, %127 : vector<1x32xf32>
    %129 = vector.extract_strided_slice %121 {offsets = [0, 96], sizes = [1, 32], strides = [1, 1]} : vector<1x128xf32> to vector<1x32xf32>
    %130 = arith.mulf %123, %111 : vector<1x32xf32>
    %131 = arith.mulf %122, %128 : vector<1x32xf32>
    %132 = arith.addf %130, %131 : vector<1x32xf32>
    %133 = math.tanh %132 : vector<1x32xf32>
    %134 = arith.mulf %129, %133 : vector<1x32xf32>
    %135 = vector.extract_strided_slice %6 {offsets = [6, 0], sizes = [1, 128], strides = [1, 1]} : vector<8x128xf32> to vector<1x128xf32>
    %cst_32 = arith.constant dense<0.000000e+00> : vector<1x128xf32>
    %136 = tpu.matmul %134, %2, %cst_32 {dimension_numbers = #tpu.dot_dimension_numbers<[1], [0], [0], [1], [0, 0, 1, 1], [], []>} : vector<1x32xf32>, vector<32x128xf32>, vector<1x128xf32> -> vector<1x128xf32>
    %137 = arith.addf %135, %136 : vector<1x128xf32>
    %138 = arith.negf %137 : vector<1x128xf32>
    %139 = math.exp %138 : vector<1x128xf32>
    %cst_33 = arith.constant 1.000000e+00 : f32
    %140 = vector.broadcast %cst_33 : f32 to vector<1x128xf32>
    %141 = arith.addf %140, %139 : vector<1x128xf32>
    %142 = arith.divf %140, %141 : vector<1x128xf32>
    %143 = vector.extract_strided_slice %142 {offsets = [0, 0], sizes = [1, 32], strides = [1, 1]} : vector<1x128xf32> to vector<1x32xf32>
    %144 = vector.extract_strided_slice %142 {offsets = [0, 32], sizes = [1, 32], strides = [1, 1]} : vector<1x128xf32> to vector<1x32xf32>
    %145 = vector.extract_strided_slice %142 {offsets = [0, 64], sizes = [1, 32], strides = [1, 1]} : vector<1x128xf32> to vector<1x32xf32>
    %cst_34 = arith.constant 2.000000e+00 : f32
    %146 = vector.broadcast %cst_34 : f32 to vector<1x32xf32>
    %147 = arith.mulf %146, %145 : vector<1x32xf32>
    %cst_35 = arith.constant 1.000000e+00 : f32
    %148 = vector.broadcast %cst_35 : f32 to vector<1x32xf32>
    %149 = arith.subf %147, %148 : vector<1x32xf32>
    %150 = vector.extract_strided_slice %142 {offsets = [0, 96], sizes = [1, 32], strides = [1, 1]} : vector<1x128xf32> to vector<1x32xf32>
    %151 = arith.mulf %144, %132 : vector<1x32xf32>
    %152 = arith.mulf %143, %149 : vector<1x32xf32>
    %153 = arith.addf %151, %152 : vector<1x32xf32>
    %154 = math.tanh %153 : vector<1x32xf32>
    %155 = arith.mulf %150, %154 : vector<1x32xf32>
    %156 = vector.extract_strided_slice %6 {offsets = [7, 0], sizes = [1, 128], strides = [1, 1]} : vector<8x128xf32> to vector<1x128xf32>
    %cst_36 = arith.constant dense<0.000000e+00> : vector<1x128xf32>
    %157 = tpu.matmul %155, %2, %cst_36 {dimension_numbers = #tpu.dot_dimension_numbers<[1], [0], [0], [1], [0, 0, 1, 1], [], []>} : vector<1x32xf32>, vector<32x128xf32>, vector<1x128xf32> -> vector<1x128xf32>
    %158 = arith.addf %156, %157 : vector<1x128xf32>
    %159 = arith.negf %158 : vector<1x128xf32>
    %160 = math.exp %159 : vector<1x128xf32>
    %cst_37 = arith.constant 1.000000e+00 : f32
    %161 = vector.broadcast %cst_37 : f32 to vector<1x128xf32>
    %162 = arith.addf %161, %160 : vector<1x128xf32>
    %163 = arith.divf %161, %162 : vector<1x128xf32>
    %164 = vector.extract_strided_slice %163 {offsets = [0, 0], sizes = [1, 32], strides = [1, 1]} : vector<1x128xf32> to vector<1x32xf32>
    %165 = vector.extract_strided_slice %163 {offsets = [0, 32], sizes = [1, 32], strides = [1, 1]} : vector<1x128xf32> to vector<1x32xf32>
    %166 = vector.extract_strided_slice %163 {offsets = [0, 64], sizes = [1, 32], strides = [1, 1]} : vector<1x128xf32> to vector<1x32xf32>
    %cst_38 = arith.constant 2.000000e+00 : f32
    %167 = vector.broadcast %cst_38 : f32 to vector<1x32xf32>
    %168 = arith.mulf %167, %166 : vector<1x32xf32>
    %cst_39 = arith.constant 1.000000e+00 : f32
    %169 = vector.broadcast %cst_39 : f32 to vector<1x32xf32>
    %170 = arith.subf %168, %169 : vector<1x32xf32>
    %171 = vector.extract_strided_slice %163 {offsets = [0, 96], sizes = [1, 32], strides = [1, 1]} : vector<1x128xf32> to vector<1x32xf32>
    %172 = arith.mulf %165, %153 : vector<1x32xf32>
    %173 = arith.mulf %164, %170 : vector<1x32xf32>
    %174 = arith.addf %172, %173 : vector<1x32xf32>
    %175 = math.tanh %174 : vector<1x32xf32>
    %176 = arith.mulf %171, %175 : vector<1x32xf32>
    %177 = tpu.concatenate %176, %174 in 0 : vector<1x32xf32>, vector<1x32xf32> -> vector<2x32xf32>
    %c0_40 = arith.constant 0 : index
    %c0_41 = arith.constant 0 : index
    %178 = vector.load %arg6[%c0_40, %c0_41] : memref<2x32xf32, #tpu.memory_space<vmem>>, vector<2x32xf32>
    tpu.vector_store %arg6[%c0_40, %c0_41], %177 {strides = array<i32>} : memref<2x32xf32, #tpu.memory_space<vmem>>, vector<2x32xf32>,
    %179 = tpu.concatenate %29, %50, %71, %92, %113, %134, %155, %176 in 0 : vector<1x32xf32>, vector<1x32xf32>, vector<1x32xf32>, vector<1x32xf32>, vector<1x32xf32>, vector<1x32xf32>, vector<1x32xf32>, vector<1x32xf32> -> vector<8x32xf32>
    %c0_42 = arith.constant 0 : index
    %c0_43 = arith.constant 0 : index
    %180 = vector.load %arg4[%c0_42, %c0_43] : memref<33x8xf32, #tpu.memory_space<vmem>>, vector<32x8xf32>
    %c32_44 = arith.constant 32 : index
    %c0_45 = arith.constant 0 : index
    %181 = vector.load %arg4[%c32_44, %c0_45] : memref<33x8xf32, #tpu.memory_space<vmem>>, vector<1x8xf32>
    %cst_46 = arith.constant dense<0.000000e+00> : vector<8x8xf32>
    %182 = tpu.matmul %179, %180, %cst_46 {dimension_numbers = #tpu.dot_dimension_numbers<[1], [0], [0], [1], [0, 0, 1, 1], [], []>} : vector<8x32xf32>, vector<32x8xf32>, vector<8x8xf32> -> vector<8x8xf32>
    %183 = vector.broadcast %181 : vector<1x8xf32> to vector<8x8xf32>
    %184 = arith.addf %182, %183 : vector<8x8xf32>
    %185 = arith.negf %184 : vector<8x8xf32>
    %186 = math.exp %185 : vector<8x8xf32>
    %cst_47 = arith.constant 1.000000e+00 : f32
    %187 = vector.broadcast %cst_47 : f32 to vector<8x8xf32>
    %188 = arith.addf %187, %186 : vector<8x8xf32>
    %189 = arith.divf %187, %188 : vector<8x8xf32>
    %c0_48 = arith.constant 0 : index
    %c0_49 = arith.constant 0 : index
    %190 = vector.load %arg5[%c0_48, %c0_49] : memref<8x8xf32, #tpu.memory_space<vmem>>, vector<8x8xf32>
    tpu.vector_store %arg5[%c0_48, %c0_49], %189 {strides = array<i32>} : memref<8x8xf32, #tpu.memory_space<vmem>>, vector<8x8xf32>,
    return
  }
  func.func @transform_0(%arg0: i32) -> (i32, i32) {
    %c0_i32 = arith.constant 0 : i32
    %c0_i32_0 = arith.constant 0 : i32
    %c0_i32_1 = arith.constant 0 : i32
    return %c0_i32, %c0_i32_0 : i32, i32
  }
  func.func @transform_1(%arg0: i32) -> (i32, i32) {
    %c0_i32 = arith.constant 0 : i32
    %c0_i32_0 = arith.constant 0 : i32
    %c0_i32_1 = arith.constant 0 : i32
    return %c0_i32, %c0_i32_0 : i32, i32
  }
  func.func @transform_2(%arg0: i32) -> (i32, i32) {
    %c0_i32 = arith.constant 0 : i32
    %c0_i32_0 = arith.constant 0 : i32
    %c0_i32_1 = arith.constant 0 : i32
    return %c0_i32, %c0_i32_0 : i32, i32
  }
  func.func @transform_3(%arg0: i32) -> (i32, i32) {
    %c0_i32 = arith.constant 0 : i32
    %c0_i32_0 = arith.constant 0 : i32
    %c0_i32_1 = arith.constant 0 : i32
    return %c0_i32, %c0_i32_0 : i32, i32
  }
  func.func @transform_4(%arg0: i32) -> (i32, i32) {
    %c0_i32 = arith.constant 0 : i32
    %c0_i32_0 = arith.constant 0 : i32
    %c0_i32_1 = arith.constant 0 : i32
    return %c0_i32, %c0_i32_0 : i32, i32
  }
  func.func @transform_5(%arg0: i32) -> (i32, i32) {
    %c0_i32 = arith.constant 0 : i32
    %c0_i32_0 = arith.constant 0 : i32
    %c0_i32_1 = arith.constant 0 : i32
    return %c0_i32, %c0_i32_0 : i32, i32
  }
}

</mosaic_0001>

<bundles_post_ra>
// kernel: tpu_custom_call.1
= control target key start
LH: loop header
LB: loop body
LE: loop exit
PB: predicated region body
PF: predicated region fallthrough
CT: control target
= control target key end

     0   :  { %11 = vsyncpa [#allocation3], 0  ;;  %s1725_s0 = inlined_call_operand.vmem [shape: f32[8,16], index: 0, kind: input, shape index: {}]   ;;  %s1726_s1 = inlined_call_operand.vmem [shape: f32[2,32], index: 1, kind: input, shape index: {}]   ;;  %s1727_s2 = inlined_call_operand.hbm [shape: f32[64,128], index: 2, kind: input, shape index: {}]   ;;  %s1728_s3 = inlined_call_operand.vmem [shape: f32[33,8], index: 3, kind: input, shape index: {}]   ;;  %s1729_s4 = inlined_call_operand.hbm [shape: f32[8,8], index: 4, kind: output, shape index: {0}]   ;;  %s1730_s5 = inlined_call_operand.hbm [shape: f32[2,32], index: 5, kind: output, shape index: {1}]  }
   0x1   :  { %12 = vsyncpa [#allocation4], 0 }
   0x2   :  { %13 = vsyncpa [#allocation7], 0  ;;  %s1506_s18 = smov [#allocation2]   ;;  %s1434_s22 = scalar_lea.hbm %s1727_s2, 1024 }
   0x3   :  { %s23_s19 = sshll.u32 %s1506_s18, 4  ;;  %p1435_p0 = scmp.ne.s32.totalorder %s1727_s2, %s1434_s22  ;;  %s24_s19 = int_to_ptr.vmem [resolvable:$true] %s23_s19 }
   0x4   :  { %p1438_p1 = scmp.lt.u32.totalorder %s1434_s22, %s1727_s2 }
   0x6   :  { %p1440_p2 = pnand %p1438_p1, %p1435_p0 }
   0x8   :  { %1443 = shalt.err (!%p1440_p2)
}
   0x9   :  { %s1444_s27 = scalar_lea.vmem %s24_s19, 1024  ;;  %p1449_p4 = scmp.lt.s32.totalorder %s24_s19, %s24_s19 }
   0xa   :  { %p1445_p3 = scmp.ne.s32.totalorder %s24_s19, %s1444_s27  ;;  %p1450_p5 = scmp.lt.s32.totalorder %s1444_s27, %s1444_s27 }
   0xc   :  { %p1451_p6 = por %p1450_p5, %p1449_p4 }
   0xe   :  { %p1452_p7 = pnand %p1451_p6, %p1445_p3 }
  0x10   :  { %1455 = shalt.err (!%p1452_p7)
}
  0x11   :  { %s1507_s28 = smov 128   ;;  %s1508_s29 = smov 8  }
  0x12   :  { %29 = dma.hbm_to_vmem [thread:$0]  %s1727_s2, 1024, %s24_s19, [#allocation3], %s1507_s28, %s1507_s28, %s1508_s29  }
  0x13   :  { %1500 = dma.done.wait [#allocation3], 1024  }
  0x14   :  { %1501 = vsyncadd [#allocation3], 4294966272  ;;  %v1509_v0 = vmov 0.0|0.0   ;;  %vm1510_vm0 = vmmov 0   ;;  %v1511_v1 = vmov 0.0   ;;  %v38_v2 = vld [vmem:[#allocation2 + $0x20] sm:$0xff] }
  0x15   :  { %1318 = vmatprep.subr.bf16.mxu1 %v1509_v0  ;;  %1315 = vmatprep.subr.bf16.mxu0 %v1509_v0  ;;  %v39_v3 = vld [vmem:[#allocation2 + $0x28] sm:$0xff]  ;;  %v35_v4 = vld [vmem:[#allocation2] sm:$0xff]  ;;  %v40_v7 = vld [vmem:[#allocation2 + $0x30] sm:$0xff]  ;;  %vm47_vm1 = vcmask 130048   ;;  %vm123_vm2 = vcmask 261120   ;;  %s1513_s12 = smov 32  }
  0x16   :  { %1213 = vmatprep.mubr.msk.f32.mxu0 %vm1510_vm0, %v1511_v1  ;;  %1224 = vmatprep.mubr.msk.f32.mxu1 %vm1510_vm0, %v1511_v1  ;;  %v1564_v5 = vpack.c.bf16 %v39_v3, %v38_v2  ;;  %v36_v6 = vld [vmem:[#allocation2 + $0x8] sm:$0xff]  ;;  %v41_v9 = vld [vmem:[#allocation2 + $0x38] sm:$0xff]  ;;  %v42_v11 = vld [vmem:[%s1725_s0] sm:$0xff]  ;;  %s1512_s0 = smov 64   ;;  %vm990_vm3 = vcmask 1040384   ;;  %vm999_vm4 = vcmask 1041408  }
  0x17   :  { %v1316_v8 = vpack.c.bf16 %v36_v6, %v35_v4  ;;  %v1567_v10 = vpack.c.bf16 %v41_v9, %v40_v7  ;;  %v121_v12 = vld [vmem:[%s1726_s1] sm:$0x1]  ;;  %v1132_v13 = vld [vmem:[#allocation2 + $0x10] ss:$0 sm:$0xff]  ;;  %v122_v26 = vld [vmem:[%s1726_s1 + $0x1] sm:$0x1] }
  0x18   :  { %1320 = vmatpush3.bf16.msra.mxu1 %v1564_v5  ;;  %vm1001_vm5 = vcmask 1042432   ;;  %vm1003_vm6 = vcmask 1043456   ;;  %vm1005_vm7 = vcmask 1044480   ;;  %vm1007_vm8 = vcmask 1045504   ;;  %s1514_s20 = smov [#allocation6]  }
  0x19   :  { %1317 = vmatpush3.bf16.msra.mxu0 %v1316_v8  ;;  %1321 = vmatprep.subr.bf16.mxu1 %v1509_v0  ;;  %vm1009_vm9 = vcmask 1046528   ;;  %vm996_vm10 = vcmask 254976   ;;  %s1119_s21 = sshll.u32 %s1514_s20, 4  ;;  %s1120_s21 = int_to_ptr.vmem [resolvable:$true] %s1119_s21 }
  0x1a   :  { %1324 = vmatprep.subr.bf16.mxu0 %v1509_v0  ;;  %s1456_s22 = scalar_lea.vmem %s1120_s21, 32  ;;  %p1461_p9 = scmp.lt.s32.totalorder %s1120_s21, %s1120_s21 }
  0x1b   :  { %p1457_p8 = scmp.ne.s32.totalorder %s1120_s21, %s1456_s22  ;;  %p1462_p10 = scmp.lt.s32.totalorder %s1456_s22, %s1456_s22 }
  0x1c   :  { %1214 = vmatmul.mubr.msk.f32.vlgmr.msra.gmra.mrb[0].mxu0 %vm47_vm1, %v42_v11  ;;  %1323 = vmatpush3.bf16.msra.mxu1 %v1567_v10 }
  0x1d   :  { %1326 = vmatpush3.bf16.msra.mxu0 %v1564_v5  ;;  %1235 = vmatprep.mubr.msk.f32.mxu0 %vm1510_vm0, %v1511_v1  ;;  %p1463_p11 = por %p1462_p10, %p1461_p9 }
  0x1e   :  { %1327 = vmatprep.subr.bf16.mxu0 %v1509_v0  ;;  %1330 = vmatprep.subr.bf16.mxu1 %v1509_v0 }
  0x1f   :  { %1225 = vmatmul.mubr.msk.f32.vlgmr.msra.gmra.mrb[0].mxu1 %vm123_vm2, %v121_v12  ;;  %p1464_p12 = pnand %p1463_p11, %p1457_p8 }
  0x20   :  { %1332 = vmatpush3.bf16.msra.mxu1 %v1564_v5  ;;  %1246 = vmatprep.mubr.msk.f32.mxu1 %vm1510_vm0, %v1511_v1 }
  0x21   :  { %1329 = vmatpush3.bf16.msra.mxu0 %v1567_v10  ;;  %1333 = vmatprep.subr.bf16.mxu1 %v1509_v0 }
  0x22   :  { %1336 = vmatprep.subr.bf16.mxu0 %v1509_v0 }
  0x24   :  { %1335 = vmatpush3.bf16.msra.mxu1 %v1567_v10 }
  0x25   :  { %1342 = vmatprep.subr.bf16.mxu1 %v1509_v0 }
  0xef   :  { %v117_v14 = vpop.f32.mrb[0].mxu0 }
  0xf0   :  { %v1592_v15 = vadd.f32 %v1132_v13, %v117_v14  ;;  %v1215_v16 = vpop.f32.mrb[1].mxu0 }
  0xf2   :  { %v193_v17 = vpop.f32.mrb[0].mxu1 }
  0xf3   :  { %v197_v18 = vadd.f32 %v193_v17, %v1592_v15  ;;  %v1226_v19 = vpop.f32.mrb[1].mxu1 }
  0xf5   :  { %v1135_v20 = vmul.f32 -1.442695, %v197_v18 }
  0xf7   :  { %1382 = vpow2.f32 %v1135_v20 }
 0x101   :  { %v1383_v21 = vpop.eup %1382 }
 0x102   :  { %v201_v22 = vadd.f32 1.0, %v1383_v21 }
 0x104   :  { %1384 = vrcp.f32 %v201_v22 }
 0x10e   :  { %v1385_v23 = vpop.eup %1384 }
 0x10f   :  { %v204_v24 = vmul.f32 2.0, %v1385_v23 }
 0x111   :  { %v1136_v25 = vadd.f32 -1.0, %v204_v24 }
 0x113   :  { %212 = vrot.lane.b32.xlu0 %v1136_v25, %s1512_s0 }
 0x117   :  { %207 = vrot.lane.b32.xlu0 %v122_v26, %s1513_s12 }
 0x185   :  { %v213_v27 = vpop.permute.xlu0 %212 }
 0x186   :  { %v215_v28 = vmul.f32 %v1385_v23, %v213_v27 }
 0x188   :  { %217 = vrot.lane.b32.xlu1 %v215_v28, %s1513_s12 }
 0x189   :  { %v208_v29 = vpop.permute.xlu0 %207 }
 0x18a   :  { %v210_v30 = vmul.f32 %v1385_v23, %v208_v29 }
 0x1fa   :  { %v218_v31 = vpop.permute.xlu1 %217 }
 0x1fb   :  { %v220_v32 = vadd.f32 %v218_v31, %v210_v30 }
 0x1fd   :  { %1386 = vtanh.f32 %v220_v32  ;;  %v315_v49 = vrot.slane %v220_v32, 7 }
 0x207   :  { %v1387_v33 = vpop.eup %1386 }
 0x208   :  { %223 = vrot.lane.b32.xlu1 %v1387_v33, %s1512_s0 }
 0x27a   :  { %v224_v34 = vpop.permute.xlu1 %223 }
 0x27b   :  { %v1602_v35 = vmul.f32 %v1385_v23, %v224_v34 }
 0x27d   :  { %228 = vrot.lane.b32.xlu0 %v1602_v35, %s1513_s12 }
 0x2ef   :  { %v229_v36 = vpop.permute.xlu0 %228 }
 0x2f0   :  { %1236 = vmatmul.mubr.msk.f32.vlgmr.msra.gmra.mrb[2].mxu0 %vm123_vm2, %v229_v36 }
 0x2f1   :  { %1338 = vmatpush3.bf16.msra.mxu0 %v1564_v5  ;;  %1257 = vmatprep.mubr.msk.f32.mxu0 %vm1510_vm0, %v1511_v1 }
 0x2f2   :  { %1339 = vmatprep.subr.bf16.mxu0 %v1509_v0 }
 0x2f5   :  { %1341 = vmatpush3.bf16.msra.mxu0 %v1567_v10 }
 0x2f6   :  { %1348 = vmatprep.subr.bf16.mxu0 %v1509_v0 }
 0x3c3   :  { %v298_v37 = vpop.f32.mrb[2].mxu0 }
 0x3c4   :  { %v303_v38 = vrot.slane %v298_v37, 7  ;;  %v1237_v39 = vpop.f32.mrb[3].mxu0 }
 0x3c6   :  { %v305_v40 = vadd.f32 %v303_v38, %v1592_v15 }
 0x3c8   :  { %v1138_v41 = vmul.f32 -1.442695, %v305_v40 }
 0x3ca   :  { %1388 = vpow2.f32 %v1138_v41 }
 0x3d4   :  { %v1389_v42 = vpop.eup %1388 }
 0x3d5   :  { %v309_v43 = vadd.f32 1.0, %v1389_v42 }
 0x3d7   :  { %1390 = vrcp.f32 %v309_v43 }
 0x3e1   :  { %v1391_v44 = vpop.eup %1390 }
 0x3e2   :  { %v312_v45 = vmul.f32 2.0, %v1391_v44  ;;  %v317_v50 = vmul.f32 %v1391_v44, %v315_v49 }
 0x3e4   :  { %v1139_v46 = vadd.f32 -1.0, %v312_v45 }
 0x3e6   :  { %319 = vrot.lane.b32.xlu1 %v1139_v46, %s1512_s0 }
 0x458   :  { %v320_v47 = vpop.permute.xlu1 %319 }
 0x459   :  { %v322_v48 = vmul.f32 %v1391_v44, %v320_v47 }
 0x45b   :  { %324 = vrot.lane.b32.xlu0 %v322_v48, %s1513_s12 }
 0x4cd   :  { %v325_v51 = vpop.permute.xlu0 %324 }
 0x4ce   :  { %v327_v52 = vadd.f32 %v325_v51, %v317_v50 }
 0x4d0   :  { %1392 = vtanh.f32 %v327_v52  ;;  %v423_v9 = vrot.slane %v327_v52, 7 }
 0x4da   :  { %v1393_v53 = vpop.eup %1392 }
 0x4db   :  { %330 = vrot.lane.b32.xlu1 %v1393_v53, %s1512_s0 }
 0x54d   :  { %v331_v54 = vpop.permute.xlu1 %330 }
 0x54e   :  { %v333_v55 = vmul.f32 %v1391_v44, %v331_v54 }
 0x550   :  { %v335_v56 = vrot.slane %v333_v55, 1  ;;  %v998_v18 = vsel %vm990_vm3, %v1602_v35, %v333_v55 }
 0x552   :  { %336 = vrot.lane.b32.xlu0 %v335_v56, %s1513_s12 }
 0x5c4   :  { %v337_v57 = vpop.permute.xlu0 %336 }
 0x5c5   :  { %1247 = vmatmul.mubr.msk.f32.vlgmr.msra.gmra.mrb[2].mxu1 %vm123_vm2, %v337_v57 }
 0x5c6   :  { %1344 = vmatpush3.bf16.msra.mxu1 %v1564_v5  ;;  %1268 = vmatprep.mubr.msk.f32.mxu1 %vm1510_vm0, %v1511_v1 }
 0x5c7   :  { %1345 = vmatprep.subr.bf16.mxu1 %v1509_v0 }
 0x5ca   :  { %1347 = vmatpush3.bf16.msra.mxu1 %v1567_v10 }
 0x5cb   :  { %1354 = vmatprep.subr.bf16.mxu1 %v1509_v0 }
 0x698   :  { %v406_v58 = vpop.f32.mrb[2].mxu1 }
 0x699   :  { %v411_v59 = vrot.slane %v406_v58, 6  ;;  %v1248_v60 = vpop.f32.mrb[3].mxu1 }
 0x69b   :  { %v413_v61 = vadd.f32 %v411_v59, %v1592_v15 }
 0x69d   :  { %v1141_v62 = vmul.f32 -1.442695, %v413_v61 }
 0x69f   :  { %1394 = vpow2.f32 %v1141_v62 }
 0x6a9   :  { %v1395_v63 = vpop.eup %1394 }
 0x6aa   :  { %v417_v2 = vadd.f32 1.0, %v1395_v63 }
 0x6ac   :  { %1396 = vrcp.f32 %v417_v2 }
 0x6b6   :  { %v1397_v3 = vpop.eup %1396 }
 0x6b7   :  { %v420_v4 = vmul.f32 2.0, %v1397_v3  ;;  %v425_v11 = vmul.f32 %v1397_v3, %v423_v9 }
 0x6b9   :  { %v1142_v6 = vadd.f32 -1.0, %v420_v4 }
 0x6bb   :  { %427 = vrot.lane.b32.xlu1 %v1142_v6, %s1512_s0 }
 0x72d   :  { %v428_v7 = vpop.permute.xlu1 %427 }
 0x72e   :  { %v430_v8 = vmul.f32 %v1397_v3, %v428_v7 }
 0x730   :  { %432 = vrot.lane.b32.xlu0 %v430_v8, %s1513_s12 }
 0x7a2   :  { %v433_v12 = vpop.permute.xlu0 %432 }
 0x7a3   :  { %v435_v13 = vadd.f32 %v433_v12, %v425_v11 }
 0x7a5   :  { %1398 = vtanh.f32 %v435_v13  ;;  %v531_v34 = vrot.slane %v435_v13, 7 }
 0x7af   :  { %v1399_v14 = vpop.eup %1398 }
 0x7b0   :  { %438 = vrot.lane.b32.xlu1 %v1399_v14, %s1512_s0 }
 0x822   :  { %v439_v16 = vpop.permute.xlu1 %438 }
 0x823   :  { %v441_v17 = vmul.f32 %v1397_v3, %v439_v16 }
 0x825   :  { %v443_v19 = vrot.slane %v441_v17, 2  ;;  %v1000_v20 = vsel %vm999_vm4, %v998_v18, %v441_v17 }
 0x827   :  { %444 = vrot.lane.b32.xlu0 %v443_v19, %s1513_s12 }
 0x899   :  { %v445_v21 = vpop.permute.xlu0 %444 }
 0x89a   :  { %1258 = vmatmul.mubr.msk.f32.vlgmr.msra.gmra.mrb[4].mxu0 %vm123_vm2, %v445_v21 }
 0x89b   :  { %1350 = vmatpush3.bf16.msra.mxu0 %v1564_v5  ;;  %1279 = vmatprep.mubr.msk.f32.mxu0 %vm1510_vm0, %v1511_v1 }
 0x89c   :  { %1351 = vmatprep.subr.bf16.mxu0 %v1509_v0 }
 0x89f   :  { %1353 = vmatpush3.bf16.msra.mxu0 %v1567_v10 }
 0x8a0   :  { %1360 = vmatprep.subr.bf16.mxu0 %v1509_v0 }
 0x96d   :  { %v514_v22 = vpop.f32.mrb[4].mxu0 }
 0x96e   :  { %v519_v23 = vrot.slane %v514_v22, 5  ;;  %v1259_v24 = vpop.f32.mrb[5].mxu0 }
 0x970   :  { %v521_v25 = vadd.f32 %v519_v23, %v1592_v15 }
 0x972   :  { %v1144_v26 = vmul.f32 -1.442695, %v521_v25 }
 0x974   :  { %1400 = vpow2.f32 %v1144_v26 }
 0x97e   :  { %v1401_v27 = vpop.eup %1400 }
 0x97f   :  { %v525_v28 = vadd.f32 1.0, %v1401_v27 }
 0x981   :  { %1402 = vrcp.f32 %v525_v28 }
 0x98b   :  { %v1403_v29 = vpop.eup %1402 }
 0x98c   :  { %v528_v30 = vmul.f32 2.0, %v1403_v29  ;;  %v533_v35 = vmul.f32 %v1403_v29, %v531_v34 }
 0x98e   :  { %v1145_v31 = vadd.f32 -1.0, %v528_v30 }
 0x990   :  { %535 = vrot.lane.b32.xlu1 %v1145_v31, %s1512_s0 }
 0xa02   :  { %v536_v32 = vpop.permute.xlu1 %535 }
 0xa03   :  { %v538_v33 = vmul.f32 %v1403_v29, %v536_v32 }
 0xa05   :  { %540 = vrot.lane.b32.xlu0 %v538_v33, %s1513_s12 }
 0xa77   :  { %v541_v36 = vpop.permute.xlu0 %540 }
 0xa78   :  { %v543_v37 = vadd.f32 %v541_v36, %v533_v35 }
 0xa7a   :  { %1404 = vtanh.f32 %v543_v37  ;;  %v639_v56 = vrot.slane %v543_v37, 7 }
 0xa84   :  { %v1405_v38 = vpop.eup %1404 }
 0xa85   :  { %546 = vrot.lane.b32.xlu1 %v1405_v38, %s1512_s0 }
 0xaf7   :  { %v547_v39 = vpop.permute.xlu1 %546 }
 0xaf8   :  { %v549_v40 = vmul.f32 %v1403_v29, %v547_v39 }
 0xafa   :  { %v551_v41 = vrot.slane %v549_v40, 3  ;;  %v1002_v42 = vsel %vm1001_vm5, %v1000_v20, %v549_v40 }
 0xafc   :  { %552 = vrot.lane.b32.xlu0 %v551_v41, %s1513_s12 }
 0xb6e   :  { %v553_v43 = vpop.permute.xlu0 %552 }
 0xb6f   :  { %1269 = vmatmul.mubr.msk.f32.vlgmr.msra.gmra.mrb[4].mxu1 %vm123_vm2, %v553_v43 }
 0xb70   :  { %1356 = vmatpush3.bf16.msra.mxu1 %v1564_v5  ;;  %1290 = vmatprep.mubr.msk.f32.mxu1 %vm1510_vm0, %v1511_v1 }
 0xb71   :  { %1357 = vmatprep.subr.bf16.mxu1 %v1509_v0 }
 0xb74   :  { %1359 = vmatpush3.bf16.msra.mxu1 %v1567_v10 }
 0xb75   :  { %1366 = vmatprep.subr.bf16.mxu1 %v1509_v0 }
 0xc42   :  { %v622_v44 = vpop.f32.mrb[4].mxu1 }
 0xc43   :  { %v627_v45 = vrot.slane %v622_v44, 4  ;;  %v1270_v46 = vpop.f32.mrb[5].mxu1 }
 0xc45   :  { %v629_v47 = vadd.f32 %v627_v45, %v1592_v15 }
 0xc47   :  { %v1147_v48 = vmul.f32 -1.442695, %v629_v47 }
 0xc49   :  { %1406 = vpow2.f32 %v1147_v48 }
 0xc53   :  { %v1407_v49 = vpop.eup %1406 }
 0xc54   :  { %v633_v50 = vadd.f32 1.0, %v1407_v49 }
 0xc56   :  { %1408 = vrcp.f32 %v633_v50 }
 0xc60   :  { %v1409_v51 = vpop.eup %1408 }
 0xc61   :  { %v636_v52 = vmul.f32 2.0, %v1409_v51  ;;  %v641_v57 = vmul.f32 %v1409_v51, %v639_v56 }
 0xc63   :  { %v1148_v53 = vadd.f32 -1.0, %v636_v52 }
 0xc65   :  { %643 = vrot.lane.b32.xlu1 %v1148_v53, %s1512_s0 }
 0xcd7   :  { %v644_v54 = vpop.permute.xlu1 %643 }
 0xcd8   :  { %v646_v55 = vmul.f32 %v1409_v51, %v644_v54 }
 0xcda   :  { %648 = vrot.lane.b32.xlu0 %v646_v55, %s1513_s12 }
 0xd4c   :  { %v649_v58 = vpop.permute.xlu0 %648 }
 0xd4d   :  { %v651_v59 = vadd.f32 %v649_v58, %v641_v57 }
 0xd4f   :  { %1410 = vtanh.f32 %v651_v59 }
 0xd59   :  { %v1411_v60 = vpop.eup %1410 }
 0xd5a   :  { %654 = vrot.lane.b32.xlu1 %v1411_v60, %s1512_s0 }
 0xdcc   :  { %v655_v61 = vpop.permute.xlu1 %654 }
 0xdcd   :  { %v657_v62 = vmul.f32 %v1409_v51, %v655_v61 }
 0xdcf   :  { %v659_v63 = vrot.slane %v657_v62, 4  ;;  %v1004_v2 = vsel %vm1003_vm6, %v1002_v42, %v657_v62 }
 0xdd1   :  { %660 = vrot.lane.b32.xlu0 %v659_v63, %s1513_s12 }
 0xe43   :  { %v661_v3 = vpop.permute.xlu0 %660 }
 0xe44   :  { %1280 = vmatmul.mubr.msk.f32.vlgmr.msra.gmra.mrb[6].mxu0 %vm123_vm2, %v661_v3  ;;  %v1013_v3 = vld [vmem:[%s1728_s3 + $0x10] sm:$0xff] }
 0xe45   :  { %1362 = vmatpush3.bf16.msra.mxu0 %v1564_v5  ;;  %1301 = vmatprep.mubr.msk.f32.mxu0 %vm1510_vm0, %v1511_v1 }
 0xe46   :  { %1363 = vmatprep.subr.bf16.mxu0 %v1509_v0 }
 0xe49   :  { %1365 = vmatpush3.bf16.msra.mxu0 %v1567_v10  ;;  %v747_v10 = vrot.slane %v651_v59, 7 }
 0xf17   :  { %v730_v4 = vpop.f32.mrb[6].mxu0 }
 0xf18   :  { %v735_v6 = vrot.slane %v730_v4, 3  ;;  %v1281_v7 = vpop.f32.mrb[7].mxu0 }
 0xf1a   :  { %v737_v8 = vadd.f32 %v735_v6, %v1592_v15  ;;  %v1014_v6 = vld [vmem:[%s1728_s3 + $0x18] sm:$0xff] }
 0xf1b   :  { %v1370_v7 = vpack.c.bf16 %v1014_v6, %v1013_v3 }
 0xf1c   :  { %v1150_v9 = vmul.f32 -1.442695, %v737_v8 }
 0xf1e   :  { %1412 = vpow2.f32 %v1150_v9 }
 0xf28   :  { %v1413_v11 = vpop.eup %1412 }
 0xf29   :  { %v741_v12 = vadd.f32 1.0, %v1413_v11 }
 0xf2b   :  { %1414 = vrcp.f32 %v741_v12 }
 0xf35   :  { %v1415_v13 = vpop.eup %1414 }
 0xf36   :  { %v744_v14 = vmul.f32 2.0, %v1415_v13  ;;  %v749_v18 = vmul.f32 %v1415_v13, %v747_v10 }
 0xf38   :  { %v1151_v5 = vadd.f32 -1.0, %v744_v14 }
 0xf3a   :  { %751 = vrot.lane.b32.xlu1 %v1151_v5, %s1512_s0 }
 0xfac   :  { %v752_v16 = vpop.permute.xlu1 %751 }
 0xfad   :  { %v754_v17 = vmul.f32 %v1415_v13, %v752_v16 }
 0xfaf   :  { %756 = vrot.lane.b32.xlu0 %v754_v17, %s1513_s12 }
0x1021   :  { %v757_v19 = vpop.permute.xlu0 %756 }
0x1022   :  { %v759_v20 = vadd.f32 %v757_v19, %v749_v18 }
0x1024   :  { %1416 = vtanh.f32 %v759_v20 }
0x102e   :  { %v1417_v21 = vpop.eup %1416 }
0x102f   :  { %762 = vrot.lane.b32.xlu1 %v1417_v21, %s1512_s0 }
0x10a1   :  { %v763_v22 = vpop.permute.xlu1 %762 }
0x10a2   :  { %v765_v23 = vmul.f32 %v1415_v13, %v763_v22 }
0x10a4   :  { %v767_v24 = vrot.slane %v765_v23, 5  ;;  %v1006_v25 = vsel %vm1005_vm7, %v1004_v2, %v765_v23  ;;  %v1012_v2 = vld [vmem:[%s1728_s3 + $0x8] sm:$0xff] }
0x10a6   :  { %768 = vrot.lane.b32.xlu0 %v767_v24, %s1513_s12 }
0x1118   :  { %v769_v26 = vpop.permute.xlu0 %768 }
0x1119   :  { %1291 = vmatmul.mubr.msk.f32.vlgmr.msra.gmra.mrb[6].mxu1 %vm123_vm2, %v769_v26 }
0x111a   :  { %1312 = vmatprep.mubr.msk.f32.mxu1 %vm1510_vm0, %v1511_v1  ;;  %v855_v1 = vrot.slane %v759_v20, 7 }
0x11ec   :  { %v838_v27 = vpop.f32.mrb[6].mxu1 }
0x11ed   :  { %v843_v28 = vrot.slane %v838_v27, 2  ;;  %v1292_v29 = vpop.f32.mrb[7].mxu1 }
0x11ef   :  { %v845_v30 = vadd.f32 %v843_v28, %v1592_v15 }
0x11f1   :  { %v1153_v31 = vmul.f32 -1.442695, %v845_v30 }
0x11f3   :  { %1418 = vpow2.f32 %v1153_v31 }
0x11fd   :  { %v1419_v32 = vpop.eup %1418 }
0x11fe   :  { %v849_v33 = vadd.f32 1.0, %v1419_v32 }
0x1200   :  { %1420 = vrcp.f32 %v849_v33 }
0x120a   :  { %v1421_v34 = vpop.eup %1420 }
0x120b   :  { %v852_v35 = vmul.f32 2.0, %v1421_v34  ;;  %v857_v39 = vmul.f32 %v1421_v34, %v855_v1 }
0x120d   :  { %v1154_v36 = vadd.f32 -1.0, %v852_v35 }
0x120f   :  { %859 = vrot.lane.b32.xlu1 %v1154_v36, %s1512_s0 }
0x1281   :  { %v860_v37 = vpop.permute.xlu1 %859 }
0x1282   :  { %v862_v38 = vmul.f32 %v1421_v34, %v860_v37 }
0x1284   :  { %864 = vrot.lane.b32.xlu0 %v862_v38, %s1513_s12 }
0x12f6   :  { %v865_v40 = vpop.permute.xlu0 %864 }
0x12f7   :  { %v867_v41 = vadd.f32 %v865_v40, %v857_v39 }
0x12f9   :  { %1422 = vtanh.f32 %v867_v41  ;;  %v963_v60 = vrot.slane %v867_v41, 7 }
0x1303   :  { %v1423_v42 = vpop.eup %1422 }
0x1304   :  { %870 = vrot.lane.b32.xlu1 %v1423_v42, %s1512_s0 }
0x1376   :  { %v871_v43 = vpop.permute.xlu1 %870 }
0x1377   :  { %v873_v44 = vmul.f32 %v1421_v34, %v871_v43 }
0x1379   :  { %v875_v45 = vrot.slane %v873_v44, 6  ;;  %v1008_v46 = vsel %vm1007_vm8, %v1006_v25, %v873_v44 }
0x137b   :  { %876 = vrot.lane.b32.xlu0 %v875_v45, %s1513_s12 }
0x13ed   :  { %v877_v47 = vpop.permute.xlu0 %876 }
0x13ee   :  { %1302 = vmatmul.mubr.msk.f32.vlgmr.msra.gmra.mrb[8].mxu0 %vm123_vm2, %v877_v47 }
0x14c1   :  { %v946_v48 = vpop.f32.mrb[8].mxu0 }
0x14c2   :  { %v951_v49 = vrot.slane %v946_v48, 1  ;;  %v1303_v50 = vpop.f32.mrb[9].mxu0 }
0x14c4   :  { %v953_v51 = vadd.f32 %v951_v49, %v1592_v15  ;;  %v1011_v15 = vld [vmem:[%s1728_s3] sm:$0xff] }
0x14c5   :  { %v1367_v4 = vpack.c.bf16 %v1012_v2, %v1011_v15 }
0x14c6   :  { %v1156_v52 = vmul.f32 -1.442695, %v953_v51 }
0x14c7   :  { %1368 = vmatpush3.bf16.msra.mxu1 %v1367_v4 }
0x14c8   :  { %1424 = vpow2.f32 %v1156_v52  ;;  %1369 = vmatprep.subr.bf16.mxu1 %v1509_v0 }
0x14cb   :  { %1371 = vmatpush3.bf16.msra.mxu1 %v1370_v7 }
0x14d2   :  { %v1425_v53 = vpop.eup %1424 }
0x14d3   :  { %v957_v54 = vadd.f32 1.0, %v1425_v53 }
0x14d5   :  { %1426 = vrcp.f32 %v957_v54 }
0x14df   :  { %v1427_v55 = vpop.eup %1426 }
0x14e0   :  { %v960_v56 = vmul.f32 2.0, %v1427_v55  ;;  %v965_v61 = vmul.f32 %v1427_v55, %v963_v60 }
0x14e2   :  { %v1157_v57 = vadd.f32 -1.0, %v960_v56 }
0x14e4   :  { %967 = vrot.lane.b32.xlu1 %v1157_v57, %s1512_s0 }
0x1556   :  { %v968_v58 = vpop.permute.xlu1 %967 }
0x1557   :  { %v970_v59 = vmul.f32 %v1427_v55, %v968_v58 }
0x1559   :  { %972 = vrot.lane.b32.xlu0 %v970_v59, %s1513_s12 }
0x15cb   :  { %v973_v62 = vpop.permute.xlu0 %972 }
0x15cc   :  { %v975_v63 = vadd.f32 %v973_v62, %v965_v61 }
0x15ce   :  { %1428 = vtanh.f32 %v975_v63  ;;  %v986_v9 = vrot.slane %v975_v63, 6 }
0x15d8   :  { %v1429_v8 = vpop.eup %1428 }
0x15d9   :  { %978 = vrot.lane.b32.xlu1 %v1429_v8, %s1512_s0 }
0x15dd   :  { %987 = vrot.lane.b32.xlu1 %v986_v9, %s1512_s0 }
0x164b   :  { %v979_v11 = vpop.permute.xlu1 %978 }
0x164c   :  { %v981_v12 = vmul.f32 %v1427_v55, %v979_v11 }
0x164e   :  { %v983_v13 = vrot.slane %v981_v12, 7  ;;  %v1010_v14 = vsel %vm1009_vm9, %v1008_v46, %v981_v12 }
0x164f   :  { %1021 = vrot.lane.b32.xlu0 %v1010_v14, %s1513_s12  ;;  %v988_v5 = vpop.permute.xlu1 %987 }
0x1650   :  { %v991_v16 = vsel %vm990_vm3, %v983_v13, %v988_v5 }
0x1653   :  { %993 = vrot.lane.b32.xlu0 %v991_v16, %s1513_s12 }
0x16c1   :  { %v1022_v0 = vpop.permute.xlu0 %1021 }
0x16c2   :  { %1313 = vmatmul.mubr.msk.f32.vlgmr.msra.gmra.mrb[8].mxu1 %vm123_vm2, %v1022_v0 }
0x16c5   :  { %v994_v17 = vpop.permute.xlu0 %993 }
0x16c6   :  { %997 = vst.msk [vmem:[#allocation6] sm:$0x3] %vm996_vm10, %v994_v17 }
0x16c7   :  { %1467 = shalt.err (!%p1464_p12)
}
0x16c8   :  { %s1468_s25 = scalar_lea.hbm %s1730_s5, 32 }
0x16c9   :  { %p1469_p13 = scmp.ne.s32.totalorder %s1730_s5, %s1468_s25  ;;  %p1472_p0 = scmp.lt.u32.totalorder %s1468_s25, %s1730_s5 }
0x16cb   :  { %p1474_p1 = pnand %p1472_p0, %p1469_p13 }
0x16cd   :  { %1477 = shalt.err (!%p1474_p1)
}
0x16ce   :  { %1122 = dma.vmem_to_hbm [thread:$0]  %s1120_s21, 32, %s1730_s5, [#allocation7]   ;;  %v1158_v10 = vld [vmem:[%s1728_s3 + $0x20] ss:$0 sm:$0xff]  ;;  %vm1101_vm11 = vcmask 64512  }
0x16cf   :  { %s1515_s8 = smov [#allocation5]  }
0x16d0   :  { %s1109_s9 = sshll.u32 %s1515_s8, 4  ;;  %s1110_s9 = int_to_ptr.vmem [resolvable:$true] %s1109_s9 }
0x16d1   :  { %s1478_s0 = scalar_lea.vmem %s1110_s9, 128  ;;  %p1483_p3 = scmp.lt.s32.totalorder %s1110_s9, %s1110_s9 }
0x16d2   :  { %p1479_p2 = scmp.ne.s32.totalorder %s1110_s9, %s1478_s0  ;;  %p1484_p4 = scmp.lt.s32.totalorder %s1478_s0, %s1478_s0 }
0x16d4   :  { %p1485_p5 = por %p1484_p4, %p1483_p3 }
0x16d6   :  { %p1486_p6 = pnand %p1485_p5, %p1479_p2 }
0x1795   :  { %v1091_v18 = vpop.f32.mrb[8].mxu1 }
0x1796   :  { %v1092_v19 = vadd.f32 %v1158_v10, %v1091_v18  ;;  %v1314_v20 = vpop.f32.mrb[9].mxu1 }
0x1798   :  { %v1160_v21 = vmul.f32 -1.442695, %v1092_v19 }
0x179a   :  { %1430 = vpow2.f32 %v1160_v21 }
0x17a4   :  { %v1431_v22 = vpop.eup %1430 }
0x17a5   :  { %v1098_v23 = vadd.f32 1.0, %v1431_v22 }
0x17a7   :  { %1432 = vrcp.f32 %v1098_v23 }
0x17b1   :  { %v1433_v24 = vpop.eup %1432 }
0x17b2   :  { %1102 = vst.msk [vmem:[#allocation5] sm:$0xff] %vm1101_vm11, %v1433_v24 }
0x17b3   :  { %1489 = shalt.err (!%p1486_p6)
}
0x17b4   :  { %s1490_s10 = scalar_lea.hbm %s1729_s4, 128 }
0x17b5   :  { %p1491_p7 = scmp.ne.s32.totalorder %s1729_s4, %s1490_s10  ;;  %p1494_p8 = scmp.lt.u32.totalorder %s1490_s10, %s1729_s4 }
0x17b7   :  { %p1496_p9 = pnand %p1494_p8, %p1491_p7 }
0x17b9   :  { %1499 = shalt.err (!%p1496_p9)
}
0x17ba   :  { %1112 = dma.vmem_to_hbm [thread:$0]  %s1110_s9, 128, %s1729_s4, [#allocation4]  }
0x17bb   :  { %1502 = dma.done.wait [#allocation4], 128  }
0x17bc   :  { %1503 = vsyncadd [#allocation4], 4294967168 }
0x17bd   :  { %1504 = dma.done.wait [#allocation7], 32  }
0x17be   :  { %1505 = vsyncadd [#allocation7], 4294967264 }
0x17bf   :  { %1129 = vsyncpa [#allocation3], 1 }
0x17c0   :  { %1130 = vsyncpa [#allocation4], 1 }
0x17c1   :  { %1131 = vsyncpa [#allocation7], 1 }

</bundles_post_ra>
